<compile_context>
chip_gen: v6e
topology: v6e:2x2x1
jax: 0.10.0
libtpu: 0.0.40
codegen_flags: <defaults>
</compile_context>

<pallas_src>
import jax
import jax.numpy as jnp
from jax.experimental import pallas as pl
from jax.experimental.pallas import tpu as pltpu


def _round_up(v, m):
    return (v + m - 1) // m * m


def _cdiv(a, b):
    return -(-a // b)


def _device_kind():
    try:
        return jax.devices()[0].device_kind.lower()
    except Exception:
        return ""


def default_num_cores():
    # v7x has 2 TensorCores per chip; v5e / v6e have 1.
    return 2 if "v7" in _device_kind() else 1


def default_epilogue_dtype():
    # v5e has no bf16 VALU -> keep bias + ReLU in f32 there; bf16 on v6e / v7x.
    return jnp.float32 if "v5" in _device_kind() else jnp.bfloat16


def _mlp_pool_kernel(
    x_ref, a_ref,
    w1_ref, b1_ref,
    w2_ref, b2_ref,
    w3_ref, b3_ref,
    w4_ref, b4_ref,
    pooled_ref,
):
    step = pl.program_id(1)  # reduction axis over node-row tiles

    @pl.when(step == 0)
    def _():
        pooled_ref[...] = jnp.zeros_like(pooled_ref)

    def layer(h_bf16, w_ref, b_ref):
        # MXU: bf16 inputs, f32 accumulation.  Epilogue dtype follows the bias
        # dtype (bf16 on v6e/v7x -> half the VALU work and h VMEM traffic,
        # f32 on v5e).
        b = b_ref[...]
        acc = jnp.dot(h_bf16, w_ref[...], preferred_element_type=jnp.float32)
        y = jnp.maximum(acc.astype(b.dtype) + b, 0.0)
        return y.astype(jnp.bfloat16)

    h = layer(x_ref[...], w1_ref, b1_ref)
    h = layer(h, w2_ref, b2_ref)
    h = layer(h, w3_ref, b3_ref)
    h = layer(h, w4_ref, b4_ref)

    # Partial per-graph SUM for this node tile: [G, TN] @ [TN, H] (f32 acc).
    # Padded rows have all-zero pooling columns, so they never contribute.
    pooled_ref[...] += jnp.dot(a_ref[...], h, preferred_element_type=jnp.float32)


def mlp_summarizer_forward(x, batch, params, num_graphs, *,
                           tile_n=2048, num_cores=None, epilogue_dtype=None):
    """x: [N, C_in] float32, batch: [N] int32 graph ids in [0, num_graphs)."""
    n, c_in = x.shape
    hidden = params["w1"].shape[0]

    if num_cores is None:
        num_cores = default_num_cores()
    if epilogue_dtype is None:
        epilogue_dtype = default_epilogue_dtype()

    # ---- tiling: large node tiles amortize per-grid-step overhead; cap at what
    # N actually needs (per core) so tiny inputs don't compute tn-1 pad rows.
    tn = max(128, min(_round_up(tile_n, 128), _round_up(_cdiv(n, num_cores), 128)))
    n_pad = _round_up(n, num_cores * tn)
    steps_per_core = n_pad // (num_cores * tn)
    grid = (num_cores, steps_per_core)

    # ---- plain-JAX glue (layout plumbing only) -----------------------------
    x_p = jnp.zeros((n_pad, c_in), jnp.bfloat16).at[:n].set(x.astype(jnp.bfloat16))

    # Un-normalized one-hot pooling matrix [G, N_pad] built in one compare pass.
    # Padded rows get id == num_graphs -> match nothing -> all-zero columns.
    batch_pad = jnp.full((n_pad,), num_graphs, jnp.int32).at[:n].set(
        batch.astype(jnp.int32))
    a = (batch_pad[None, :] ==
         jnp.arange(num_graphs, dtype=jnp.int32)[:, None]).astype(jnp.bfloat16)

    counts = jax.ops.segment_sum(jnp.ones((n,), jnp.float32), batch,
                                 num_segments=num_graphs)
    inv_counts = (1.0 / jnp.maximum(counts, 1.0))[:, None]      # [G, 1] f32

    # nn.Linear weights pre-transposed to [in, out], bf16 for the MXU; biases in
    # the epilogue dtype (this is what selects the in-kernel epilogue precision).
    w1t = params["w1"].T.astype(jnp.bfloat16)
    w2t = params["w2"].T.astype(jnp.bfloat16)
    w3t = params["w3"].T.astype(jnp.bfloat16)
    w4t = params["w4"].T.astype(jnp.bfloat16)
    b1 = params["b1"].reshape(1, hidden).astype(epilogue_dtype)
    b2 = params["b2"].reshape(1, hidden).astype(epilogue_dtype)
    b3 = params["b3"].reshape(1, hidden).astype(epilogue_dtype)
    b4 = params["b4"].reshape(1, hidden).astype(epilogue_dtype)

    def resident(shape):
        return pl.BlockSpec(shape, lambda c, i: tuple(0 for _ in shape))

    # Pooling-matrix stream: deepen the pipeline only when it is the dominant
    # HBM stream on v5e (tile >= ~1 MiB); otherwise default double-buffering.
    kind = _device_kind()
    a_tile_bytes = num_graphs * tn * 2
    if "v5" in kind and a_tile_bytes >= (1 << 20):
        a_bufs = 3
        a_spec = pl.BlockSpec((num_graphs, tn),
                              lambda c, i: (0, c * steps_per_core + i),
                              pipeline_mode=pl.Buffered(3))
    else:
        a_bufs = 2
        a_spec = pl.BlockSpec((num_graphs, tn),
                              lambda c, i: (0, c * steps_per_core + i))

    # Right-size (or skip) the VMEM limit instead of hard-coding 48 MiB.
    bias_bytes = 4 * hidden * jnp.dtype(epilogue_dtype).itemsize
    weight_bytes = 2 * (c_in * hidden + 3 * hidden * hidden) + bias_bytes
    vmem_need = (weight_bytes
                 + 2 * tn * c_in * 2                 # x tile, double-buffered
                 + a_bufs * a_tile_bytes             # pooling tile buffers
                 + 2 * num_graphs * hidden * 4)      # resident pooled accumulator
    vmem_limit = None
    if vmem_need > 24 * (1 << 20):
        vmem_limit = int(min(vmem_need * 3 // 2, 110 * (1 << 20)))

    flops = 2 * n_pad * (c_in * hidden + 3 * hidden * hidden + num_graphs * hidden)
    bytes_accessed = (x_p.size * 2 + a.size * 2 + weight_bytes
                      + num_cores * num_graphs * hidden * 4)

    partials = pl.pallas_call(
        _mlp_pool_kernel,
        out_shape=jax.ShapeDtypeStruct((num_cores, num_graphs, hidden), jnp.float32),
        grid=grid,
        in_specs=[
            # x tile: node rows -> sublanes.
            pl.BlockSpec((tn, c_in), lambda c, i: (c * steps_per_core + i, 0)),
            # pooling tile: node rows -> lanes.
            a_spec,
            resident(w1t.shape), resident(b1.shape),
            resident(w2t.shape), resident(b2.shape),
            resident(w3t.shape), resident(b3.shape),
            resident(w4t.shape), resident(b4.shape),
        ],
        # Per-core partial pooled slab: block index constant across the reduction
        # axis -> stays resident in VMEM and acts as the accumulator.
        out_specs=pl.BlockSpec((None, num_graphs, hidden), lambda c, i: (c, 0, 0)),
        compiler_params=pltpu.CompilerParams(
            dimension_semantics=("parallel", "arbitrary"),
            vmem_limit_bytes=vmem_limit,
        ),
        cost_estimate=pl.CostEstimate(
            flops=flops, transcendentals=0, bytes_accessed=bytes_accessed),
    )(x_p, a, w1t, b1, w2t, b2, w3t, b3, w4t, b4)

    # XLA finalize: sum per-core partials, global_mean_pool scaling, tiny
    # [G, H] @ [H, out] classifier + sigmoid (keeps the kernel output lane-dense
    # instead of a 1-lane masked store).
    pooled = partials.sum(axis=0) * inv_counts
    logits = pooled @ params["wc"].T.astype(jnp.float32) + params["bc"]
    return jax.nn.sigmoid(logits)


def init_params(key, in_channels, hidden_channels, out_channels=1):
    """Deterministic synthetic parameters with nn.Linear shapes: W [out, in], b [out]."""
    keys = jax.random.split(key, 10)

    def lin(kw, kb, fan_out, fan_in):
        bound = 1.0 / jnp.sqrt(fan_in)
        w = jax.random.uniform(kw, (fan_out, fan_in), jnp.float32, -bound, bound)
        b = jax.random.uniform(kb, (fan_out,), jnp.float32, -bound, bound)
        return w, b

    w1, b1 = lin(keys[0], keys[1], hidden_channels, in_channels)
    w2, b2 = lin(keys[2], keys[3], hidden_channels, hidden_channels)
    w3, b3 = lin(keys[4], keys[5], hidden_channels, hidden_channels)
    w4, b4 = lin(keys[6], keys[7], hidden_channels, hidden_channels)
    wc, bc = lin(keys[8], keys[9], out_channels, hidden_channels)
    return dict(w1=w1, b1=b1, w2=w2, b2=b2, w3=w3, b3=b3,
                w4=w4, b4=b4, wc=wc, bc=bc)


def reference_forward(x, batch, params, num_graphs, *,
                      matmul_dtype=jnp.float32, epilogue_dtype=jnp.float32):
    """Pure-JAX reference. matmul/epilogue dtypes mimic the kernel's precision."""
    def layer(h, w, b):
        y = jnp.dot(h.astype(matmul_dtype), w.T.astype(matmul_dtype),
                    preferred_element_type=jnp.float32)
        y = y.astype(epilogue_dtype) + b.astype(epilogue_dtype)
        return jnp.maximum(y, 0.0).astype(jnp.float32)

    h = layer(x, params["w1"], params["b1"])
    h = layer(h, params["w2"], params["b2"])
    h = layer(h, params["w3"], params["b3"])
    h = layer(h, params["w4"], params["b4"])
    h = h.astype(matmul_dtype).astype(jnp.float32)   # kernel pools bf16 h in f32
    sums = jax.ops.segment_sum(h, batch, num_segments=num_graphs)
    cnts = jax.ops.segment_sum(jnp.ones((x.shape[0],), jnp.float32), batch,
                               num_segments=num_graphs)
    pooled = sums / jnp.maximum(cnts, 1.0)[:, None]
    return jax.nn.sigmoid(pooled @ params["wc"].T + params["bc"])


if __name__ == "__main__":
    key = jax.random.PRNGKey(0)
    epi = default_epilogue_dtype()

    # --- test 1: tiny shapes (one tile per core) ----------------------------
    N, C_IN, HIDDEN, OUT, NUM_GRAPHS = 8, 16, 32, 1, 2
    kx, kp, kb, kx2, kp2 = jax.random.split(key, 5)
    x = jax.random.normal(kx, (N, C_IN), dtype=jnp.float32)
    batch = jnp.array([0, 0, 0, 0, 1, 1, 1, 1], dtype=jnp.int32)
    params = init_params(kp, C_IN, HIDDEN, OUT)

    out = jax.block_until_ready(mlp_summarizer_forward(x, batch, params, NUM_GRAPHS))
    assert out.shape == (NUM_GRAPHS, OUT)
    ref_m = reference_forward(x, batch, params, NUM_GRAPHS,
                              matmul_dtype=jnp.bfloat16, epilogue_dtype=epi)
    ref_f = reference_forward(x, batch, params, NUM_GRAPHS)
    assert jnp.allclose(out, ref_m, atol=2e-3, rtol=2e-3)    # matched-precision
    assert jnp.allclose(out, ref_f, atol=5e-2, rtol=5e-2)    # torch-semantics sanity

    # --- test 2: multi-step grid (accumulation + last-tile padding) ---------
    N2, C_IN2, HIDDEN2, NUM_GRAPHS2 = 300, 64, 128, 3
    x2 = jax.random.normal(kx2, (N2, C_IN2), dtype=jnp.float32)
    batch2 = jax.random.randint(kb, (N2,), 0, NUM_GRAPHS2, dtype=jnp.int32)
    params2 = init_params(kp2, C_IN2, HIDDEN2, OUT)

    out2 = jax.block_until_ready(
        mlp_summarizer_forward(x2, batch2, params2, NUM_GRAPHS2, tile_n=128))
    ref2_m = reference_forward(x2, batch2, params2, NUM_GRAPHS2,
                               matmul_dtype=jnp.bfloat16, epilogue_dtype=epi)
    ref2_f = reference_forward(x2, batch2, params2, NUM_GRAPHS2)
    assert out2.shape == (NUM_GRAPHS2, OUT)
    assert jnp.allclose(out2, ref2_m, atol=2e-3, rtol=2e-3)
    assert jnp.allclose(out2, ref2_f, atol=5e-2, rtol=5e-2)

    # --- test 3: force the 2-core (v7x-style) split on whatever chip we have ---
    out3 = jax.block_until_ready(
        mlp_summarizer_forward(x2, batch2, params2, NUM_GRAPHS2,
                               tile_n=128, num_cores=2))
    assert jnp.allclose(out3, ref2_m, atol=2e-3, rtol=2e-3)

    print("KERNEL_OK")
</pallas_src>

<mosaic_0001>
module attributes {stable_mosaic.version = 11 : i64} {
  func.func @_mlp_pool_kernel(%arg0: i32, %arg1: i32, %arg2: memref<128x16xbf16, #tpu.memory_space<vmem>>, %arg3: memref<2x128xbf16, #tpu.memory_space<vmem>>, %arg4: memref<16x32xbf16, #tpu.memory_space<vmem>>, %arg5: memref<1x32xbf16, #tpu.memory_space<vmem>>, %arg6: memref<32x32xbf16, #tpu.memory_space<vmem>>, %arg7: memref<1x32xbf16, #tpu.memory_space<vmem>>, %arg8: memref<32x32xbf16, #tpu.memory_space<vmem>>, %arg9: memref<1x32xbf16, #tpu.memory_space<vmem>>, %arg10: memref<32x32xbf16, #tpu.memory_space<vmem>>, %arg11: memref<1x32xbf16, #tpu.memory_space<vmem>>, %arg12: memref<1x2x32xf32, #tpu.memory_space<vmem>>) attributes {dimension_semantics = [#tpu.dimension_semantics<parallel>, #tpu.dimension_semantics<arbitrary>], iteration_bounds = array<i64: 1, 1>, scalar_prefetch = 0 : i64, scratch_operands = 0 : i64, tpu.core_type = #tpu.core_type<tc>, window_params = [{transform_indices = @transform_0, window_bounds = array<i64: 128, 16>}, {transform_indices = @transform_1, window_bounds = array<i64: 2, 128>}, {pipeline_mode = #tpu.pipeline_mode<synchronous>, transform_indices = @transform_2, window_bounds = array<i64: 16, 32>}, {pipeline_mode = #tpu.pipeline_mode<synchronous>, transform_indices = @transform_3, window_bounds = array<i64: 1, 32>}, {pipeline_mode = #tpu.pipeline_mode<synchronous>, transform_indices = @transform_4, window_bounds = array<i64: 32, 32>}, {pipeline_mode = #tpu.pipeline_mode<synchronous>, transform_indices = @transform_5, window_bounds = array<i64: 1, 32>}, {pipeline_mode = #tpu.pipeline_mode<synchronous>, transform_indices = @transform_6, window_bounds = array<i64: 32, 32>}, {pipeline_mode = #tpu.pipeline_mode<synchronous>, transform_indices = @transform_7, window_bounds = array<i64: 1, 32>}, {pipeline_mode = #tpu.pipeline_mode<synchronous>, transform_indices = @transform_8, window_bounds = array<i64: 32, 32>}, {pipeline_mode = #tpu.pipeline_mode<synchronous>, transform_indices = @transform_9, window_bounds = array<i64: 1, 32>}, {transform_indices = @transform_10, window_bounds = array<i64: 1, 2, 32>}]} {
    %c0_i32 = arith.constant 0 : i32
    %0 = arith.cmpi eq, %arg1, %c0_i32 : i32
    %1 = arith.extui %0 : i1 to i32
    %c0_i32_0 = arith.constant 0 : i32
    %2 = arith.cmpi ne, %1, %c0_i32_0 : i32
    scf.if %2 {
      %cst_34 = arith.constant 0.000000e+00 : f32
      %44 = vector.broadcast %cst_34 : f32 to vector<2x32xf32>
      %c0_35 = arith.constant 0 : index
      %c0_36 = arith.constant 0 : index
      %c0_37 = arith.constant 0 : index
      %45 = vector.load %arg12[%c0_35, %c0_36, %c0_37] : memref<1x2x32xf32, #tpu.memory_space<vmem>>, vector<1x2x32xf32>
      %46 = vector.shape_cast %45 : vector<1x2x32xf32> to vector<2x32xf32>
      %47 = vector.shape_cast %44 : vector<2x32xf32> to vector<1x2x32xf32>
      tpu.vector_store %arg12[%c0_35, %c0_36, %c0_37], %47 {strides = array<i32>} : memref<1x2x32xf32, #tpu.memory_space<vmem>>, vector<1x2x32xf32>,
    } else {
    }
    %c0 = arith.constant 0 : index
    %c0_1 = arith.constant 0 : index
    %3 = vector.load %arg2[%c0, %c0_1] : memref<128x16xbf16, #tpu.memory_space<vmem>>, vector<128x16xbf16>
    %c0_2 = arith.constant 0 : index
    %c0_3 = arith.constant 0 : index
    %4 = vector.load %arg5[%c0_2, %c0_3] : memref<1x32xbf16, #tpu.memory_space<vmem>>, vector<1x32xbf16>
    %c0_4 = arith.constant 0 : index
    %c0_5 = arith.constant 0 : index
    %5 = vector.load %arg4[%c0_4, %c0_5] : memref<16x32xbf16, #tpu.memory_space<vmem>>, vector<16x32xbf16>
    %cst = arith.constant dense<0.000000e+00> : vector<128x32xf32>
    %6 = tpu.matmul %3, %5, %cst {dimension_numbers = #tpu.dot_dimension_numbers<[1], [0], [0], [1], [0, 0, 1, 1], [], []>} : vector<128x16xbf16>, vector<16x32xbf16>, vector<128x32xf32> -> vector<128x32xf32>
    %7 = arith.truncf %6 : vector<128x32xf32> to vector<128x32xbf16>
    %8 = vector.broadcast %4 : vector<1x32xbf16> to vector<128x32xbf16>
    %9 = arith.addf %7, %8 : vector<128x32xbf16>
    %cst_6 = arith.constant 0.000000e+00 : bf16
    %10 = vector.broadcast %cst_6 : bf16 to vector<128x32xbf16>
    %11 = arith.maximumf %9, %10 : vector<128x32xbf16>
    %c0_7 = arith.constant 0 : index
    %c0_8 = arith.constant 0 : index
    %12 = vector.load %arg7[%c0_7, %c0_8] : memref<1x32xbf16, #tpu.memory_space<vmem>>, vector<1x32xbf16>
    %c0_9 = arith.constant 0 : index
    %c0_10 = arith.constant 0 : index
    %13 = vector.load %arg6[%c0_9, %c0_10] : memref<32x32xbf16, #tpu.memory_space<vmem>>, vector<32x32xbf16>
    %cst_11 = arith.constant dense<0.000000e+00> : vector<128x32xf32>
    %14 = tpu.matmul %11, %13, %cst_11 {dimension_numbers = #tpu.dot_dimension_numbers<[1], [0], [0], [1], [0, 0, 1, 1], [], []>} : vector<128x32xbf16>, vector<32x32xbf16>, vector<128x32xf32> -> vector<128x32xf32>
    %15 = arith.truncf %14 : vector<128x32xf32> to vector<128x32xbf16>
    %16 = vector.broadcast %12 : vector<1x32xbf16> to vector<128x32xbf16>
    %17 = arith.addf %15, %16 : vector<128x32xbf16>
    %cst_12 = arith.constant 0.000000e+00 : bf16
    %18 = vector.broadcast %cst_12 : bf16 to vector<128x32xbf16>
    %19 = arith.maximumf %17, %18 : vector<128x32xbf16>
    %c0_13 = arith.constant 0 : index
    %c0_14 = arith.constant 0 : index
    %20 = vector.load %arg9[%c0_13, %c0_14] : memref<1x32xbf16, #tpu.memory_space<vmem>>, vector<1x32xbf16>
    %c0_15 = arith.constant 0 : index
    %c0_16 = arith.constant 0 : index
    %21 = vector.load %arg8[%c0_15, %c0_16] : memref<32x32xbf16, #tpu.memory_space<vmem>>, vector<32x32xbf16>
    %cst_17 = arith.constant dense<0.000000e+00> : vector<128x32xf32>
    %22 = tpu.matmul %19, %21, %cst_17 {dimension_numbers = #tpu.dot_dimension_numbers<[1], [0], [0], [1], [0, 0, 1, 1], [], []>} : vector<128x32xbf16>, vector<32x32xbf16>, vector<128x32xf32> -> vector<128x32xf32>
    %23 = arith.truncf %22 : vector<128x32xf32> to vector<128x32xbf16>
    %24 = vector.broadcast %20 : vector<1x32xbf16> to vector<128x32xbf16>
    %25 = arith.addf %23, %24 : vector<128x32xbf16>
    %cst_18 = arith.constant 0.000000e+00 : bf16
    %26 = vector.broadcast %cst_18 : bf16 to vector<128x32xbf16>
    %27 = arith.maximumf %25, %26 : vector<128x32xbf16>
    %c0_19 = arith.constant 0 : index
    %c0_20 = arith.constant 0 : index
    %28 = vector.load %arg11[%c0_19, %c0_20] : memref<1x32xbf16, #tpu.memory_space<vmem>>, vector<1x32xbf16>
    %c0_21 = arith.constant 0 : index
    %c0_22 = arith.constant 0 : index
    %29 = vector.load %arg10[%c0_21, %c0_22] : memref<32x32xbf16, #tpu.memory_space<vmem>>, vector<32x32xbf16>
    %cst_23 = arith.constant dense<0.000000e+00> : vector<128x32xf32>
    %30 = tpu.matmul %27, %29, %cst_23 {dimension_numbers = #tpu.dot_dimension_numbers<[1], [0], [0], [1], [0, 0, 1, 1], [], []>} : vector<128x32xbf16>, vector<32x32xbf16>, vector<128x32xf32> -> vector<128x32xf32>
    %31 = arith.truncf %30 : vector<128x32xf32> to vector<128x32xbf16>
    %32 = vector.broadcast %28 : vector<1x32xbf16> to vector<128x32xbf16>
    %33 = arith.addf %31, %32 : vector<128x32xbf16>
    %cst_24 = arith.constant 0.000000e+00 : bf16
    %34 = vector.broadcast %cst_24 : bf16 to vector<128x32xbf16>
    %35 = arith.maximumf %33, %34 : vector<128x32xbf16>
    %c0_25 = arith.constant 0 : index
    %c0_26 = arith.constant 0 : index
    %c0_27 = arith.constant 0 : index
    %36 = vector.load %arg12[%c0_25, %c0_26, %c0_27] : memref<1x2x32xf32, #tpu.memory_space<vmem>>, vector<1x2x32xf32>
    %37 = vector.shape_cast %36 : vector<1x2x32xf32> to vector<2x32xf32>
    %c0_28 = arith.constant 0 : index
    %c0_29 = arith.constant 0 : index
    %38 = vector.load %arg3[%c0_28, %c0_29] : memref<2x128xbf16, #tpu.memory_space<vmem>>, vector<2x128xbf16>
    %cst_30 = arith.constant dense<0.000000e+00> : vector<2x32xf32>
    %39 = tpu.matmul %38, %35, %cst_30 {dimension_numbers = #tpu.dot_dimension_numbers<[1], [0], [0], [1], [0, 0, 1, 1], [], []>} : vector<2x128xbf16>, vector<128x32xbf16>, vector<2x32xf32> -> vector<2x32xf32>
    %40 = arith.addf %37, %39 : vector<2x32xf32>
    %c0_31 = arith.constant 0 : index
    %c0_32 = arith.constant 0 : index
    %c0_33 = arith.constant 0 : index
    %41 = vector.load %arg12[%c0_31, %c0_32, %c0_33] : memref<1x2x32xf32, #tpu.memory_space<vmem>>, vector<1x2x32xf32>
    %42 = vector.shape_cast %41 : vector<1x2x32xf32> to vector<2x32xf32>
    %43 = vector.shape_cast %40 : vector<2x32xf32> to vector<1x2x32xf32>
    tpu.vector_store %arg12[%c0_31, %c0_32, %c0_33], %43 {strides = array<i32>} : memref<1x2x32xf32, #tpu.memory_space<vmem>>, vector<1x2x32xf32>,
    return
  }
  func.func @transform_0(%arg0: i32, %arg1: i32) -> (i32, i32) {
    %c1_i32 = arith.constant 1 : i32
    %0 = arith.muli %arg0, %c1_i32 : i32
    %1 = arith.addi %0, %arg1 : i32
    %c0_i32 = arith.constant 0 : i32
    %c0_i32_0 = arith.constant 0 : i32
    return %1, %c0_i32 : i32, i32
  }
  func.func @transform_1(%arg0: i32, %arg1: i32) -> (i32, i32) {
    %c1_i32 = arith.constant 1 : i32
    %0 = arith.muli %arg0, %c1_i32 : i32
    %1 = arith.addi %0, %arg1 : i32
    %c0_i32 = arith.constant 0 : i32
    %c0_i32_0 = arith.constant 0 : i32
    return %c0_i32, %1 : i32, i32
  }
  func.func @transform_2(%arg0: i32, %arg1: i32) -> (i32, i32) {
    %c0_i32 = arith.constant 0 : i32
    %c0_i32_0 = arith.constant 0 : i32
    %c0_i32_1 = arith.constant 0 : i32
    return %c0_i32, %c0_i32_0 : i32, i32
  }
  func.func @transform_3(%arg0: i32, %arg1: i32) -> (i32, i32) {
    %c0_i32 = arith.constant 0 : i32
    %c0_i32_0 = arith.constant 0 : i32
    %c0_i32_1 = arith.constant 0 : i32
    return %c0_i32, %c0_i32_0 : i32, i32
  }
  func.func @transform_4(%arg0: i32, %arg1: i32) -> (i32, i32) {
    %c0_i32 = arith.constant 0 : i32
    %c0_i32_0 = arith.constant 0 : i32
    %c0_i32_1 = arith.constant 0 : i32
    return %c0_i32, %c0_i32_0 : i32, i32
  }
  func.func @transform_5(%arg0: i32, %arg1: i32) -> (i32, i32) {
    %c0_i32 = arith.constant 0 : i32
    %c0_i32_0 = arith.constant 0 : i32
    %c0_i32_1 = arith.constant 0 : i32
    return %c0_i32, %c0_i32_0 : i32, i32
  }
  func.func @transform_6(%arg0: i32, %arg1: i32) -> (i32, i32) {
    %c0_i32 = arith.constant 0 : i32
    %c0_i32_0 = arith.constant 0 : i32
    %c0_i32_1 = arith.constant 0 : i32
    return %c0_i32, %c0_i32_0 : i32, i32
  }
  func.func @transform_7(%arg0: i32, %arg1: i32) -> (i32, i32) {
    %c0_i32 = arith.constant 0 : i32
    %c0_i32_0 = arith.constant 0 : i32
    %c0_i32_1 = arith.constant 0 : i32
    return %c0_i32, %c0_i32_0 : i32, i32
  }
  func.func @transform_8(%arg0: i32, %arg1: i32) -> (i32, i32) {
    %c0_i32 = arith.constant 0 : i32
    %c0_i32_0 = arith.constant 0 : i32
    %c0_i32_1 = arith.constant 0 : i32
    return %c0_i32, %c0_i32_0 : i32, i32
  }
  func.func @transform_9(%arg0: i32, %arg1: i32) -> (i32, i32) {
    %c0_i32 = arith.constant 0 : i32
    %c0_i32_0 = arith.constant 0 : i32
    %c0_i32_1 = arith.constant 0 : i32
    return %c0_i32, %c0_i32_0 : i32, i32
  }
  func.func @transform_10(%arg0: i32, %arg1: i32) -> (i32, i32, i32) {
    %c0_i32 = arith.constant 0 : i32
    %c0_i32_0 = arith.constant 0 : i32
    %c0_i32_1 = arith.constant 0 : i32
    return %arg0, %c0_i32, %c0_i32_0 : i32, i32, i32
  }
}

</mosaic_0001>

<bundles_post_ra>
// kernel: tpu_custom_call.1
= control target key start
LH: loop header
LB: loop body
LE: loop exit
PB: predicated region body
PF: predicated region fallthrough
CT: control target
= control target key end

     0   :  { %vm144_vm0 = vcmask 130048   ;;  %s1301_s0 = inlined_call_operand.vmem [shape: bf16[128,16], index: 0, kind: input, shape index: {}]   ;;  %s1302_s1 = inlined_call_operand.vmem [shape: bf16[2,128], index: 1, kind: input, shape index: {}]   ;;  %s1303_s2 = inlined_call_operand.vmem [shape: bf16[16,32], index: 2, kind: input, shape index: {}]   ;;  %s1304_s3 = inlined_call_operand.vmem [shape: bf16[1,32], index: 3, kind: input, shape index: {}]   ;;  %s1305_s4 = inlined_call_operand.vmem [shape: bf16[32,32], index: 4, kind: input, shape index: {}]   ;;  %s1306_s5 = inlined_call_operand.vmem [shape: bf16[1,32], index: 5, kind: input, shape index: {}]   ;;  %s1307_s6 = inlined_call_operand.vmem [shape: bf16[32,32], index: 6, kind: input, shape index: {}]   ;;  %s1308_s7 = inlined_call_operand.vmem [shape: bf16[1,32], index: 7, kind: input, shape index: {}]   ;;  %s1309_s8 = inlined_call_operand.vmem [shape: bf16[32,32], index: 8, kind: input, shape index: {}]   ;;  %s1310_s9 = inlined_call_operand.vmem [shape: bf16[1,32], index: 9, kind: input, shape index: {}]   ;;  %s1311_s10 = inlined_call_operand.hbm [shape: f32[1,2,32], index: 10, kind: output, shape index: {}]  }
   0x1   :  { %v1070_v0 = vld [vmem:[%s1303_s2] sm:$0xff]   ;;  %v1072_v2 = vld [vmem:[%s1301_s0 + $0x8] sm:$0xff]   ;;  %v1073_v3 = vld [vmem:[%s1301_s0 + $0x10] sm:$0xff]  }
   0x2   :  { %v1071_v1 = vld [vmem:[%s1301_s0] sm:$0xff]   ;;  %968 = vmatprep.subr.bf16.mxu0 %v1070_v0  ;;  %v1074_v4 = vld [vmem:[%s1301_s0 + $0x18] sm:$0xff]  }
   0x3   :  { %969 = vmatpush3.bf16.msra.mxu0 %v1070_v0  ;;  %970 = vmatprep.mubr.msk.bf16.mxu0 %vm144_vm0, %v1071_v1  ;;  %v1075_v5 = vld [vmem:[%s1301_s0 + $0x20] sm:$0xff]  }
   0x6   :  { %971 = vmatmul.mubr.msk.bf16.vlgmr.msra.gmra.mxu0 %vm144_vm0, %v1072_v2 }
   0x7   :  { %974 = vmatprep.mubr.msk.bf16.mxu0 %vm144_vm0, %v1073_v3 }
   0x8   :  { %15 = vsyncpa [#allocation3], 0  ;;  %v1076_v6 = vld [vmem:[%s1301_s0 + $0x28] sm:$0xff]   ;;  %v1077_v7 = vld [vmem:[%s1301_s0 + $0x30] sm:$0xff]   ;;  %v277_v13 = vlaneseq  ;;  %vm314_vm1 = vcmask 261120   ;;  %v1107_v29 = vmov 0  }
   0x9   :  { %v1078_v8 = vld [vmem:[%s1301_s0 + $0x38] sm:$0xff]   ;;  %v1079_v9 = vld [vmem:[%s1305_s4 + $0x8] sm:$0xff]   ;;  %v1080_v10 = vld [vmem:[%s1305_s4] sm:$0xff]   ;;  %vm1109_vm2 = vmmov 0   ;;  %vm77_vm3 = vcmask 254976   ;;  %s1110_s23 = smov [#allocation2]  }
   0xa   :  { %986 = vmatprep.subr.bf16.mxu1 %v1079_v9  ;;  %v1081_v11 = vld [vmem:[%s1307_s6 + $0x8] sm:$0xff]   ;;  %v1082_v12 = vld [vmem:[%s1307_s6] sm:$0xff]   ;;  %v278_v14 = vshrl.u32 %v277_v13, 7  ;;  %s856_s24 = sshll.u32 %s1110_s23, 4  ;;  %s857_s24 = int_to_ptr.vmem [resolvable:$true] %s856_s24 }
   0xb   :  { %987 = vmatpush3.bf16.msra.mxu1 %v1079_v9  ;;  %1006 = vmatprep.subr.bf16.mxu0 %v1081_v11  ;;  %v95_v15 = vld [vmem:[%s1304_s3] sm:$0x1]  ;;  %v1083_v60 = vld [vmem:[%s1309_s8 + $0x8] sm:$0xff]   ;;  %s1085_s25 = scalar_lea.vmem %s857_s24, 32  ;;  %p1090_p1 = scmp.lt.s32.totalorder %s857_s24, %s857_s24 }
   0xc   :  { %988 = vmatprep.subr.bf16.mxu1 %v1080_v10  ;;  %1007 = vmatpush3.bf16.msra.mxu0 %v1081_v11  ;;  %v275_v17 = vpack.i.b16 %v95_v15, %v95_v15  ;;  %v1216_v18 = vsub.s32 0, %v278_v14  ;;  %v1084_v61 = vld [vmem:[%s1309_s8] sm:$0xff]   ;;  %p1086_p0 = scmp.ne.s32.totalorder %s857_s24, %s1085_s25  ;;  %p1091_p2 = scmp.lt.s32.totalorder %s1085_s25, %s1085_s25 }
   0xd   :  { %1008 = vmatprep.subr.bf16.mxu0 %v1082_v12  ;;  %v297_v62 = vld [vmem:[%s1306_s5] sm:$0x1] }
   0xe   :  { %975 = vmatmul.mubr.msk.bf16.gmra.mxu0 %vm144_vm0, %v1074_v4  ;;  %v280_v21 = vrot.slane %v275_v17, %v1216_v18  ;;  %v445_v0 = vpack.i.b16 %v297_v62, %v297_v62  ;;  %p1092_p3 = por %p1091_p2, %p1090_p1 }
   0xf   :  { %978 = vmatprep.mubr.msk.bf16.mxu0 %vm144_vm0, %v1075_v5  ;;  %989 = vmatpush3.bf16.msra.mxu1 %v1080_v10 }
  0x10   :  { %1009 = vmatpush3.bf16.msra.mxu0 %v1082_v12  ;;  %1026 = vmatprep.subr.bf16.mxu1 %v1083_v60  ;;  %v450_v3 = vrot.slane %v445_v0, %v1216_v18  ;;  %p1093_p4 = pnand %p1092_p3, %p1086_p0 }
  0x16   :  { %979 = vmatmul.mubr.msk.bf16.gmra.mxu0 %vm144_vm0, %v1076_v6 }
  0x17   :  { %982 = vmatprep.mubr.msk.bf16.mxu0 %vm144_vm0, %v1077_v7 }
  0x1e   :  { %983 = vmatmul.mubr.msk.bf16.gmra.mxu0 %vm144_vm0, %v1078_v8 }
  0xc6   :  { %v972_v16 = vpop.f32.mrf.mxu0 }
  0xc8   :  { %v203_v19 = vpop.f32.mrf.mxu0 }
  0xca   :  { %v973_v20 = vpop.f32.mrf.mxu0 }
  0xcb   :  { %v267_v22 = vpack.c.bf16 %v973_v20, %v972_v16 }
  0xcc   :  { %v206_v23 = vpop.f32.mrf.mxu0 }
  0xcd   :  { %v266_v24 = vpack.c.bf16 %v206_v23, %v203_v19  ;;  %v282_v25 = vadd.bf16 %v280_v21, %v267_v22 }
  0xce   :  { %v976_v26 = vpop.f32.mrf.mxu0 }
  0xcf   :  { %v281_v27 = vadd.bf16 %v280_v21, %v266_v24  ;;  %v290_v31 = vmax.bf16 %v1107_v29, %v282_v25 }
  0xd0   :  { %v219_v28 = vpop.f32.mrf.mxu0 }
  0xd1   :  { %v289_v30 = vmax.bf16 %v1107_v29, %v281_v27 }
  0xd2   :  { %v977_v32 = vpop.f32.mrf.mxu0 }
  0xd3   :  { %v269_v33 = vpack.c.bf16 %v977_v32, %v976_v26  ;;  %990 = vmatprep.mubr.msk.bf16.mxu1 %vm314_vm1, %v289_v30 }
  0xd4   :  { %v222_v34 = vpop.f32.mrf.mxu0  ;;  %991 = vmatmul.mubr.msk.bf16.vlgmr.msra.gmra.mxu1 %vm314_vm1, %v290_v31 }
  0xd5   :  { %v268_v35 = vpack.c.bf16 %v222_v34, %v219_v28  ;;  %v284_v36 = vadd.bf16 %v280_v21, %v269_v33  ;;  %1027 = vmatpush3.bf16.msra.mxu1 %v1083_v60 }
  0xd6   :  { %v980_v37 = vpop.f32.mrf.mxu0  ;;  %1028 = vmatprep.subr.bf16.mxu1 %v1084_v61 }
  0xd7   :  { %v283_v38 = vadd.bf16 %v280_v21, %v268_v35  ;;  %v292_v41 = vmax.bf16 %v1107_v29, %v284_v36 }
  0xd8   :  { %v235_v39 = vpop.f32.mrf.mxu0 }
  0xd9   :  { %v291_v40 = vmax.bf16 %v1107_v29, %v283_v38  ;;  %1029 = vmatpush3.bf16.msra.mxu1 %v1084_v61 }
  0xda   :  { %v981_v42 = vpop.f32.mrf.mxu0 }
  0xdb   :  { %v271_v43 = vpack.c.bf16 %v981_v42, %v980_v37  ;;  %994 = vmatprep.mubr.msk.bf16.mxu1 %vm314_vm1, %v291_v40 }
  0xdc   :  { %v238_v44 = vpop.f32.mrf.mxu0  ;;  %995 = vmatmul.mubr.msk.bf16.gmra.mxu1 %vm314_vm1, %v292_v41 }
  0xdd   :  { %v270_v45 = vpack.c.bf16 %v238_v44, %v235_v39  ;;  %v286_v46 = vadd.bf16 %v280_v21, %v271_v43  ;;  %v467_v43 = vld [vmem:[%s1308_s7] sm:$0x1] }
  0xde   :  { %v984_v47 = vpop.f32.mrf.mxu0 }
  0xdf   :  { %v285_v48 = vadd.bf16 %v280_v21, %v270_v45  ;;  %v294_v51 = vmax.bf16 %v1107_v29, %v286_v46  ;;  %v614_v45 = vpack.i.b16 %v467_v43, %v467_v43 }
  0xe0   :  { %v251_v49 = vpop.f32.mrf.mxu0 }
  0xe1   :  { %v293_v50 = vmax.bf16 %v1107_v29, %v285_v48  ;;  %v619_v48 = vrot.slane %v614_v45, %v1216_v18 }
  0xe2   :  { %v985_v52 = vpop.f32.mrf.mxu0 }
  0xe3   :  { %v273_v53 = vpack.c.bf16 %v985_v52, %v984_v47  ;;  %998 = vmatprep.mubr.msk.bf16.mxu1 %vm314_vm1, %v293_v50 }
  0xe4   :  { %v254_v54 = vpop.f32.mrf.mxu0  ;;  %999 = vmatmul.mubr.msk.bf16.gmra.mxu1 %vm314_vm1, %v294_v51 }
  0xe5   :  { %v272_v55 = vpack.c.bf16 %v254_v54, %v251_v49  ;;  %v288_v56 = vadd.bf16 %v280_v21, %v273_v53 }
  0xe7   :  { %v287_v57 = vadd.bf16 %v280_v21, %v272_v55  ;;  %v296_v59 = vmax.bf16 %v1107_v29, %v288_v56 }
  0xe9   :  { %v295_v58 = vmax.bf16 %v1107_v29, %v287_v57 }
  0xeb   :  { %1002 = vmatprep.mubr.msk.bf16.mxu1 %vm314_vm1, %v295_v58 }
  0xec   :  { %1003 = vmatmul.mubr.msk.bf16.gmra.mxu1 %vm314_vm1, %v296_v59 }
 0x194   :  { %v992_v63 = vpop.f32.mrf.mxu1 }
 0x196   :  { %v373_v1 = vpop.f32.mrf.mxu1 }
 0x198   :  { %v993_v2 = vpop.f32.mrf.mxu1 }
 0x199   :  { %v437_v4 = vpack.c.bf16 %v993_v2, %v992_v63 }
 0x19a   :  { %v376_v5 = vpop.f32.mrf.mxu1 }
 0x19b   :  { %v436_v6 = vpack.c.bf16 %v376_v5, %v373_v1  ;;  %v452_v7 = vadd.bf16 %v450_v3, %v437_v4 }
 0x19c   :  { %v996_v8 = vpop.f32.mrf.mxu1 }
 0x19d   :  { %v451_v9 = vadd.bf16 %v450_v3, %v436_v6  ;;  %v460_v12 = vmax.bf16 %v1107_v29, %v452_v7 }
 0x19e   :  { %v389_v10 = vpop.f32.mrf.mxu1 }
 0x19f   :  { %v459_v11 = vmax.bf16 %v1107_v29, %v451_v9 }
 0x1a0   :  { %v997_v13 = vpop.f32.mrf.mxu1 }
 0x1a1   :  { %v439_v14 = vpack.c.bf16 %v997_v13, %v996_v8  ;;  %1010 = vmatprep.mubr.msk.bf16.mxu0 %vm314_vm1, %v459_v11 }
 0x1a2   :  { %v392_v15 = vpop.f32.mrf.mxu1  ;;  %1011 = vmatmul.mubr.msk.bf16.vlgmr.msra.gmra.mxu0 %vm314_vm1, %v460_v12 }
 0x1a3   :  { %v438_v16 = vpack.c.bf16 %v392_v15, %v389_v10  ;;  %v454_v17 = vadd.bf16 %v450_v3, %v439_v14 }
 0x1a4   :  { %v1000_v19 = vpop.f32.mrf.mxu1 }
 0x1a5   :  { %v453_v20 = vadd.bf16 %v450_v3, %v438_v16  ;;  %v462_v23 = vmax.bf16 %v1107_v29, %v454_v17 }
 0x1a6   :  { %v405_v21 = vpop.f32.mrf.mxu1 }
 0x1a7   :  { %v461_v22 = vmax.bf16 %v1107_v29, %v453_v20 }
 0x1a8   :  { %v1001_v24 = vpop.f32.mrf.mxu1 }
 0x1a9   :  { %v441_v25 = vpack.c.bf16 %v1001_v24, %v1000_v19  ;;  %1014 = vmatprep.mubr.msk.bf16.mxu0 %vm314_vm1, %v461_v22 }
 0x1aa   :  { %v408_v26 = vpop.f32.mrf.mxu1  ;;  %1015 = vmatmul.mubr.msk.bf16.gmra.mxu0 %vm314_vm1, %v462_v23  ;;  %v1108_v23 = vmov 0.0  }
 0x1ab   :  { %v440_v27 = vpack.c.bf16 %v408_v26, %v405_v21  ;;  %v456_v28 = vadd.bf16 %v450_v3, %v441_v25  ;;  %1046 = vmatprep.subr.bf16.mxu0 %v1108_v23  ;;  %78 = vst.msk [vmem:[#allocation2] sm:$0x3] %vm77_vm3, %v1108_v23 }
 0x1ac   :  { %v1004_v30 = vpop.f32.mrf.mxu1 }
 0x1ad   :  { %v455_v31 = vadd.bf16 %v450_v3, %v440_v27  ;;  %v464_v34 = vmax.bf16 %v1107_v29, %v456_v28 }
 0x1ae   :  { %v421_v32 = vpop.f32.mrf.mxu1 }
 0x1af   :  { %v463_v33 = vmax.bf16 %v1107_v29, %v455_v31 }
 0x1b0   :  { %v1005_v35 = vpop.f32.mrf.mxu1 }
 0x1b1   :  { %v443_v36 = vpack.c.bf16 %v1005_v35, %v1004_v30  ;;  %1018 = vmatprep.mubr.msk.bf16.mxu0 %vm314_vm1, %v463_v33 }
 0x1b2   :  { %v424_v37 = vpop.f32.mrf.mxu1  ;;  %1019 = vmatmul.mubr.msk.bf16.gmra.mxu0 %vm314_vm1, %v464_v34 }
 0x1b3   :  { %v442_v38 = vpack.c.bf16 %v424_v37, %v421_v32  ;;  %v458_v39 = vadd.bf16 %v450_v3, %v443_v36  ;;  %v636_v36 = vld [vmem:[%s1310_s9] sm:$0x1] }
 0x1b5   :  { %v457_v40 = vadd.bf16 %v450_v3, %v442_v38  ;;  %v466_v42 = vmax.bf16 %v1107_v29, %v458_v39  ;;  %v783_v39 = vpack.i.b16 %v636_v36, %v636_v36 }
 0x1b7   :  { %v465_v41 = vmax.bf16 %v1107_v29, %v457_v40 }
 0x1b9   :  { %1022 = vmatprep.mubr.msk.bf16.mxu0 %vm314_vm1, %v465_v41 }
 0x1ba   :  { %1023 = vmatmul.mubr.msk.bf16.gmra.mxu0 %vm314_vm1, %v466_v42  ;;  %v788_v42 = vrot.slane %v783_v39, %v1216_v18 }
 0x1bb   :  { %1062 = vmatprep.mubr.msk.bf16.mxu0 %vm1109_vm2, %v1108_v23 }
 0x262   :  { %v1012_v44 = vpop.f32.mrf.mxu0 }
 0x264   :  { %v542_v46 = vpop.f32.mrf.mxu0 }
 0x266   :  { %v1013_v47 = vpop.f32.mrf.mxu0 }
 0x267   :  { %v606_v49 = vpack.c.bf16 %v1013_v47, %v1012_v44 }
 0x268   :  { %v545_v50 = vpop.f32.mrf.mxu0 }
 0x269   :  { %v605_v51 = vpack.c.bf16 %v545_v50, %v542_v46  ;;  %v621_v52 = vadd.bf16 %v619_v48, %v606_v49 }
 0x26a   :  { %v1016_v53 = vpop.f32.mrf.mxu0 }
 0x26b   :  { %v620_v54 = vadd.bf16 %v619_v48, %v605_v51  ;;  %v629_v57 = vmax.bf16 %v1107_v29, %v621_v52 }
 0x26c   :  { %v558_v55 = vpop.f32.mrf.mxu0 }
 0x26d   :  { %v628_v56 = vmax.bf16 %v1107_v29, %v620_v54 }
 0x26e   :  { %v1017_v58 = vpop.f32.mrf.mxu0 }
 0x26f   :  { %v608_v59 = vpack.c.bf16 %v1017_v58, %v1016_v53  ;;  %1030 = vmatprep.mubr.msk.bf16.mxu1 %vm314_vm1, %v628_v56 }
 0x270   :  { %v561_v60 = vpop.f32.mrf.mxu0  ;;  %1031 = vmatmul.mubr.msk.bf16.vlgmr.msra.gmra.mxu1 %vm314_vm1, %v629_v57 }
 0x271   :  { %v607_v61 = vpack.c.bf16 %v561_v60, %v558_v55  ;;  %v623_v62 = vadd.bf16 %v619_v48, %v608_v59 }
 0x272   :  { %v1020_v63 = vpop.f32.mrf.mxu0 }
 0x273   :  { %v622_v0 = vadd.bf16 %v619_v48, %v607_v61  ;;  %v631_v3 = vmax.bf16 %v1107_v29, %v623_v62 }
 0x274   :  { %v574_v1 = vpop.f32.mrf.mxu0 }
 0x275   :  { %v630_v2 = vmax.bf16 %v1107_v29, %v622_v0 }
 0x276   :  { %v1021_v4 = vpop.f32.mrf.mxu0 }
 0x277   :  { %v610_v5 = vpack.c.bf16 %v1021_v4, %v1020_v63  ;;  %1034 = vmatprep.mubr.msk.bf16.mxu1 %vm314_vm1, %v630_v2  ;;  %v805_v4 = vld [vmem:[#allocation2] sm:$0x3] }
 0x278   :  { %v577_v6 = vpop.f32.mrf.mxu0  ;;  %1035 = vmatmul.mubr.msk.bf16.gmra.mxu1 %vm314_vm1, %v631_v3  ;;  %v806_v3 = vld [vmem:[%s1302_s1] sm:$0x1] }
 0x279   :  { %v609_v7 = vpack.c.bf16 %v577_v6, %v574_v1  ;;  %v625_v8 = vadd.bf16 %v619_v48, %v610_v5 }
 0x27a   :  { %v1024_v9 = vpop.f32.mrf.mxu0 }
 0x27b   :  { %v624_v10 = vadd.bf16 %v619_v48, %v609_v7  ;;  %v633_v13 = vmax.bf16 %v1107_v29, %v625_v8 }
 0x27c   :  { %v590_v11 = vpop.f32.mrf.mxu0 }
 0x27d   :  { %v632_v12 = vmax.bf16 %v1107_v29, %v624_v10 }
 0x27e   :  { %v1025_v14 = vpop.f32.mrf.mxu0 }
 0x27f   :  { %v612_v15 = vpack.c.bf16 %v1025_v14, %v1024_v9  ;;  %1038 = vmatprep.mubr.msk.bf16.mxu1 %vm314_vm1, %v632_v12 }
 0x280   :  { %v593_v16 = vpop.f32.mrf.mxu0  ;;  %1039 = vmatmul.mubr.msk.bf16.gmra.mxu1 %vm314_vm1, %v633_v13 }
 0x281   :  { %v611_v17 = vpack.c.bf16 %v593_v16, %v590_v11  ;;  %v627_v19 = vadd.bf16 %v619_v48, %v612_v15 }
 0x283   :  { %v626_v20 = vadd.bf16 %v619_v48, %v611_v17  ;;  %v635_v22 = vmax.bf16 %v1107_v29, %v627_v19 }
 0x285   :  { %v634_v21 = vmax.bf16 %v1107_v29, %v626_v20 }
 0x287   :  { %1042 = vmatprep.mubr.msk.bf16.mxu1 %vm314_vm1, %v634_v21 }
 0x288   :  { %1043 = vmatmul.mubr.msk.bf16.gmra.mxu1 %vm314_vm1, %v635_v22 }
 0x330   :  { %v1032_v24 = vpop.f32.mrf.mxu1 }
 0x332   :  { %v711_v25 = vpop.f32.mrf.mxu1 }
 0x334   :  { %v1033_v26 = vpop.f32.mrf.mxu1 }
 0x335   :  { %v775_v58 = vpack.c.bf16 %v1033_v26, %v1032_v24 }
 0x336   :  { %v714_v27 = vpop.f32.mrf.mxu1 }
 0x337   :  { %v790_v61 = vadd.bf16 %v788_v42, %v775_v58  ;;  %v774_v62 = vpack.c.bf16 %v714_v27, %v711_v25 }
 0x338   :  { %v1036_v28 = vpop.f32.mrf.mxu1 }
 0x339   :  { %v798_v0 = vmax.bf16 %v1107_v29, %v790_v61  ;;  %v789_v1 = vadd.bf16 %v788_v42, %v774_v62 }
 0x33a   :  { %v727_v30 = vpop.f32.mrf.mxu1 }
 0x33b   :  { %v797_v2 = vmax.bf16 %v1107_v29, %v789_v1 }
 0x33c   :  { %v1037_v31 = vpop.f32.mrf.mxu1 }
 0x33d   :  { %v777_v53 = vpack.c.bf16 %v1037_v31, %v1036_v28 }
 0x33e   :  { %v730_v32 = vpop.f32.mrf.mxu1 }
 0x33f   :  { %v792_v55 = vadd.bf16 %v788_v42, %v777_v53  ;;  %v776_v56 = vpack.c.bf16 %v730_v32, %v727_v30 }
 0x340   :  { %v1040_v33 = vpop.f32.mrf.mxu1 }
 0x341   :  { %v800_v59 = vmax.bf16 %v1107_v29, %v792_v55  ;;  %v791_v60 = vadd.bf16 %v788_v42, %v776_v56 }
 0x342   :  { %v743_v34 = vpop.f32.mrf.mxu1 }
 0x343   :  { %v799_v63 = vmax.bf16 %v1107_v29, %v791_v60 }
 0x344   :  { %v1041_v35 = vpop.f32.mrf.mxu1 }
 0x345   :  { %v779_v47 = vpack.c.bf16 %v1041_v35, %v1040_v33 }
 0x346   :  { %v746_v37 = vpop.f32.mrf.mxu1 }
 0x347   :  { %v794_v50 = vadd.bf16 %v788_v42, %v779_v47  ;;  %v778_v51 = vpack.c.bf16 %v746_v37, %v743_v34 }
 0x348   :  { %v1044_v38 = vpop.f32.mrf.mxu1 }
 0x349   :  { %v802_v54 = vmax.bf16 %v1107_v29, %v794_v50  ;;  %v793_v18 = vadd.bf16 %v788_v42, %v778_v51 }
 0x34a   :  { %v759_v40 = vpop.f32.mrf.mxu1 }
 0x34b   :  { %v801_v57 = vmax.bf16 %v1107_v29, %v793_v18 }
 0x34c   :  { %v1045_v41 = vpop.f32.mrf.mxu1 }
 0x34d   :  { %v781_v43 = vpack.c.bf16 %v1045_v41, %v1044_v38 }
 0x34e   :  { %v762_v44 = vpop.f32.mrf.mxu1 }
 0x34f   :  { %v796_v45 = vadd.bf16 %v788_v42, %v781_v43  ;;  %v780_v46 = vpack.c.bf16 %v762_v44, %v759_v40 }
 0x351   :  { %v804_v48 = vmax.bf16 %v1107_v29, %v796_v45  ;;  %v795_v49 = vadd.bf16 %v788_v42, %v780_v46 }
 0x353   :  { %1047 = vmatpush3.bf16.msra.mxu0 %v804_v48  ;;  %v803_v52 = vmax.bf16 %v1107_v29, %v795_v49 }
 0x354   :  { %1048 = vmatprep.subr.bf16.mxu0 %v1108_v23 }
 0x357   :  { %1049 = vmatpush3.bf16.msra.mxu0 %v803_v52 }
 0x358   :  { %1050 = vmatprep.subr.bf16.mxu0 %v1108_v23 }
 0x35b   :  { %1051 = vmatpush3.bf16.msra.mxu0 %v802_v54 }
 0x35c   :  { %1052 = vmatprep.subr.bf16.mxu0 %v1108_v23 }
 0x35f   :  { %1053 = vmatpush3.bf16.msra.mxu0 %v801_v57 }
 0x360   :  { %1054 = vmatprep.subr.bf16.mxu0 %v1108_v23 }
 0x363   :  { %1055 = vmatpush3.bf16.msra.mxu0 %v800_v59 }
 0x364   :  { %1056 = vmatprep.subr.bf16.mxu0 %v1108_v23 }
 0x367   :  { %1057 = vmatpush3.bf16.msra.mxu0 %v799_v63 }
 0x368   :  { %1058 = vmatprep.subr.bf16.mxu0 %v1108_v23 }
 0x36b   :  { %1059 = vmatpush3.bf16.msra.mxu0 %v798_v0 }
 0x36c   :  { %1060 = vmatprep.subr.bf16.mxu0 %v1108_v23 }
 0x36f   :  { %1061 = vmatpush3.bf16.msra.mxu0 %v797_v2 }
 0x372   :  { %1063 = vmatmul.mubr.bf16.vlgmr.msra.gmra.mxu0 %v806_v3 }
 0x432   :  { %v841_v5 = vpop.f32.mrf.mxu0 }
 0x433   :  { %v847_v6 = vadd.f32 %v841_v5, %v805_v4 }
 0x434   :  { %v1064_v7 = vpop.f32.mrf.mxu0 }
 0x435   :  { %849 = vst.msk [vmem:[#allocation2] sm:$0x3] %vm77_vm3, %v847_v6 }
 0x436   :  { %v844_v8 = vpop.f32.mrf.mxu0 }
 0x437   :  { %1096 = shalt.err (!%p1093_p4)
}
 0x438   :  { %859 = dma.vmem_to_hbm [thread:$0]  %s857_s24, 32, %s1311_s10, [#allocation3]   ;;  %v1065_v29 = vpop.f32.mrf.mxu0 }
 0x439   :  { %1105 = dma.done.wait [#allocation3], 32  }
 0x43a   :  { %1106 = vsyncadd [#allocation3], 4294967264 }
 0x43b   :  { %863 = vsyncpa [#allocation3], 1 }

</bundles_post_ra>
